<compile_context>
chip_gen: v6e
topology: v6e:2x2x1
jax: 0.10.0
libtpu: 0.0.40
codegen_flags: <defaults>
</compile_context>

<pallas_src>
import functools

import jax
import jax.numpy as jnp
from jax.experimental import pallas as pl
from jax.experimental.pallas import tpu as pltpu


def _round_up(x, m):
    return -(-x // m) * m


def weight_norm(v, g):
    # PyTorch nn.utils.weight_norm on Conv1d: norm over all dims except dim 0.
    # v: (C_out, C_in, K), g: (C_out, 1, 1)
    norm = jnp.sqrt(jnp.sum(v * v, axis=(1, 2), keepdims=True))
    return g * v / norm


def _gated_conv1d_kernel(x_ref, w_ref, b_ref, o_ref, col_ref, *,
                         B, K, C_in, C_out, L, L_out, Lpad, padding, dilation,
                         epilogue_dtype):
    # x_ref:   (B, C_in, L)        f32  NCL input tile (B batch elements)
    # w_ref:   (2*C_out, K*C_in)   bf16 fused im2col weights (tanh-path ++ gate-path)
    # b_ref:   (2*C_out, 1)        f32  fused biases
    # o_ref:   (B, C_out, L_out)        NCL output tile
    # col_ref: (K*C_in, B*Lpad)    bf16 im2col slab (VMEM scratch)

    # --- im2col staging -------------------------------------------------------
    # Tap k of batch element b reads padded-input columns [k*d - p, k*d - p + L_out).
    # Only the narrow zero-halo strips are written explicitly; the tail columns
    # [b*Lpad + L_out, (b+1)*Lpad) stay uninitialized (they feed output columns that
    # are never stored), so there is no per-step full-slab zero fill and no
    # scratch-persistence assumption (megacore-safe).
    for b in range(B):
        xb = x_ref[b].astype(col_ref.dtype)          # (C_in, L), one bf16 cast per element
        base = b * Lpad                               # 128-aligned lane offset
        for k in range(K):
            rows = slice(k * C_in, (k + 1) * C_in)
            src_start = k * dilation - padding        # first input column read by tap k
            s0 = max(0, min(L, src_start))
            s1 = max(0, min(L, src_start + L_out))
            left = min(L_out, max(0, -src_start))     # leading zero-halo width
            valid = s1 - s0
            right = L_out - left - valid              # trailing zero-halo width
            if left:
                col_ref[rows, base:base + left] = jnp.zeros((C_in, left), col_ref.dtype)
            if valid:
                col_ref[rows, base + left:base + left + valid] = xb[:, s0:s1]
            if right:
                col_ref[rows, base + left + valid:base + L_out] = (
                    jnp.zeros((C_in, right), col_ref.dtype))

    # --- single MXU matmul for both gates of all B elements --------------------
    # (2*C_out, K*C_in) @ (K*C_in, B*Lpad), f32 accumulation.
    acc = jnp.dot(w_ref[...], col_ref[...], preferred_element_type=jnp.float32)

    # --- epilogue: bias + tanh*sigmoid on the valid columns only ---------------
    bias = b_ref[...]                                 # (2*C_out, 1) f32
    for b in range(B):
        cols = slice(b * Lpad, b * Lpad + L_out)
        f = jnp.tanh((acc[:C_out, cols] + bias[:C_out, :]).astype(epilogue_dtype))
        g = jax.nn.sigmoid((acc[C_out:, cols] + bias[C_out:, :]).astype(epilogue_dtype))
        o_ref[b] = (f * g).astype(o_ref.dtype)


def gated_conv1d(x_ncl, vf, gf, bf, vg, gg, bg, *,
                 stride=1, padding=1, dilation=1,
                 batch_tile=None, mxu_dtype=jnp.bfloat16,
                 epilogue_dtype=jnp.float32, out_dtype=None):
    """x_ncl: (N, C_in, L).  Returns (N, C_out, L_out), same as the PyTorch module."""
    assert stride == 1, "kernel written for stride=1 (module default; groups=1 assumed)"
    N, C_in, L = x_ncl.shape
    C_out, _, K = vf.shape
    L_out = (L + 2 * padding - dilation * (K - 1) - 1) // stride + 1
    Lpad = _round_up(L_out, 128)          # per-element lane stride inside the im2col slab

    if batch_tile is None:
        # Largest divisor of N that is <= 8 while still leaving >= 2 grid steps, so the
        # "parallel" batch axis can be sharded across both v7x TensorCores.
        cands = [d for d in range(1, N + 1) if N % d == 0 and d <= 8 and N // d >= 2]
        batch_tile = max(cands) if cands else N
    assert N % batch_tile == 0
    B = batch_tile
    out_dtype = x_ncl.dtype if out_dtype is None else out_dtype

    # --- tiny, grid-invariant weight prep (wrapper side) ---
    wf = weight_norm(vf, gf)                                  # (C_out, C_in, K)
    wg = weight_norm(vg, gg)
    w = jnp.concatenate([wf, wg], axis=0)                     # (2*C_out, C_in, K)
    # im2col weight layout: column k*C_in + c  <->  w[:, c, k]  (matches the col slab rows)
    w2 = jnp.transpose(w, (0, 2, 1)).reshape(2 * C_out, K * C_in).astype(mxu_dtype)
    bias = jnp.concatenate([bf, bg], axis=0).reshape(2 * C_out, 1).astype(jnp.float32)

    kernel = functools.partial(
        _gated_conv1d_kernel, B=B, K=K, C_in=C_in, C_out=C_out, L=L,
        L_out=L_out, Lpad=Lpad, padding=padding, dilation=dilation,
        epilogue_dtype=epilogue_dtype)

    return pl.pallas_call(
        kernel,
        out_shape=jax.ShapeDtypeStruct((N, C_out, L_out), out_dtype),
        grid_spec=pltpu.PrefetchScalarGridSpec(
            num_scalar_prefetch=0,
            grid=(N // B,),
            in_specs=[
                pl.BlockSpec((B, C_in, L), lambda n: (n, 0, 0)),          # x (NCL, f32)
                pl.BlockSpec((2 * C_out, K * C_in), lambda n: (0, 0)),    # fused im2col weights
                pl.BlockSpec((2 * C_out, 1), lambda n: (0, 0)),           # fused biases
            ],
            out_specs=pl.BlockSpec((B, C_out, L_out), lambda n: (n, 0, 0)),
            scratch_shapes=[pltpu.VMEM((K * C_in, B * Lpad), mxu_dtype)],
        ),
        compiler_params=pltpu.CompilerParams(
            dimension_semantics=("parallel",),
            vmem_limit_bytes=48 * 1024 * 1024),
    )(x_ncl, w2, bias)


def _reference(x_ncl, vf, gf, bf, vg, gg, bg, *, padding=1, dilation=1):
    # Pure-JAX f32 reference using lax conv (NCL / OIK convention, same as torch).
    wf = weight_norm(vf, gf)
    wg = weight_norm(vg, gg)
    dn = jax.lax.conv_dimension_numbers(x_ncl.shape, wf.shape, ("NCH", "OIH", "NCH"))

    def conv(w, b):
        y = jax.lax.conv_general_dilated(
            x_ncl, w, window_strides=(1,), padding=[(padding, padding)],
            rhs_dilation=(dilation,), dimension_numbers=dn)
        return y + b[None, :, None]

    return jnp.tanh(conv(wf, bf)) * jax.nn.sigmoid(conv(wg, bg))


if __name__ == "__main__":
    # Small shapes consistent with the module: batch=2, in_ch=4, out_ch=8,
    # length=16, kernel_size=3, stride=1, padding=1, dilation=1.
    N, C_in, C_out, L, K = 2, 4, 8, 16, 3
    key = jax.random.PRNGKey(0)
    k1, k2, k3, k4, k5, k6, k7 = jax.random.split(key, 7)

    x = jax.random.normal(k1, (N, C_in, L), jnp.float32)

    # Deterministic weight-norm parameters (v, g) and biases for both convs.
    vf = jax.random.normal(k2, (C_out, C_in, K), jnp.float32) * 0.3
    vg = jax.random.normal(k3, (C_out, C_in, K), jnp.float32) * 0.3
    gf = jax.random.uniform(k4, (C_out, 1, 1), jnp.float32, 0.5, 1.5)
    gg = jax.random.uniform(k5, (C_out, 1, 1), jnp.float32, 0.5, 1.5)
    bf = jax.random.normal(k6, (C_out,), jnp.float32) * 0.1
    bg = jax.random.normal(k7, (C_out,), jnp.float32) * 0.1

    out = gated_conv1d(x, vf, gf, bf, vg, gg, bg,
                       stride=1, padding=1, dilation=1)
    out = jax.block_until_ready(out)

    ref = _reference(x, vf, gf, bf, vg, gg, bg, padding=1, dilation=1)
    assert out.shape == ref.shape == (N, C_out, L)
    # bf16 MXU operands (f32 accumulation) -> slightly looser tolerance than pure f32.
    assert jnp.allclose(out, ref, atol=2e-2, rtol=2e-2), "mismatch vs reference"

    print("KERNEL_OK")
</pallas_src>

<mosaic_0001>
module attributes {stable_mosaic.version = 11 : i64} {
  func.func @_gated_conv1d_kernel(%arg0: i32, %arg1: memref<1x4x16xf32, #tpu.memory_space<vmem>>, %arg2: memref<16x12xbf16, #tpu.memory_space<vmem>>, %arg3: memref<16x1xf32, #tpu.memory_space<vmem>>, %arg4: memref<1x8x16xf32, #tpu.memory_space<vmem>>, %arg5: memref<12x128xbf16, #tpu.memory_space<vmem>>) attributes {dimension_semantics = [#tpu.dimension_semantics<parallel>], iteration_bounds = array<i64: 2>, scalar_prefetch = 0 : i64, scratch_operands = 1 : i64, tpu.core_type = #tpu.core_type<tc>, window_params = [{transform_indices = @transform_0, window_bounds = array<i64: 1, 4, 16>}, {pipeline_mode = #tpu.pipeline_mode<synchronous>, transform_indices = @transform_1, window_bounds = array<i64: 16, 12>}, {pipeline_mode = #tpu.pipeline_mode<synchronous>, transform_indices = @transform_2, window_bounds = array<i64: 16, 1>}, {transform_indices = @transform_3, window_bounds = array<i64: 1, 8, 16>}]} {
    %c0 = arith.constant 0 : index
    %c0_0 = arith.constant 0 : index
    %c0_1 = arith.constant 0 : index
    %0 = vector.load %arg1[%c0, %c0_0, %c0_1] : memref<1x4x16xf32, #tpu.memory_space<vmem>>, vector<1x4x16xf32>
    %1 = vector.shape_cast %0 : vector<1x4x16xf32> to vector<4x16xf32>
    %2 = arith.truncf %1 : vector<4x16xf32> to vector<4x16xbf16>
    %cst = arith.constant 0.000000e+00 : bf16
    %3 = vector.broadcast %cst : bf16 to vector<4x1xbf16>
    %c0_2 = arith.constant 0 : index
    %c0_3 = arith.constant 0 : index
    %4 = vector.load %arg5[%c0_2, %c0_3] : memref<12x128xbf16, #tpu.memory_space<vmem>>, vector<4x1xbf16>
    tpu.vector_store %arg5[%c0_2, %c0_3], %3 {strides = array<i32>} : memref<12x128xbf16, #tpu.memory_space<vmem>>, vector<4x1xbf16>,
    %5 = vector.extract_strided_slice %2 {offsets = [0, 0], sizes = [4, 15], strides = [1, 1]} : vector<4x16xbf16> to vector<4x15xbf16>
    %c0_4 = arith.constant 0 : index
    %c1 = arith.constant 1 : index
    %6 = vector.load %arg5[%c0_4, %c1] : memref<12x128xbf16, #tpu.memory_space<vmem>>, vector<4x15xbf16>
    tpu.vector_store %arg5[%c0_4, %c1], %5 {strides = array<i32>} : memref<12x128xbf16, #tpu.memory_space<vmem>>, vector<4x15xbf16>,
    %c4 = arith.constant 4 : index
    %c0_5 = arith.constant 0 : index
    %7 = vector.load %arg5[%c4, %c0_5] : memref<12x128xbf16, #tpu.memory_space<vmem>>, vector<4x16xbf16>
    tpu.vector_store %arg5[%c4, %c0_5], %2 {strides = array<i32>} : memref<12x128xbf16, #tpu.memory_space<vmem>>, vector<4x16xbf16>,
    %8 = vector.extract_strided_slice %2 {offsets = [0, 1], sizes = [4, 15], strides = [1, 1]} : vector<4x16xbf16> to vector<4x15xbf16>
    %c8 = arith.constant 8 : index
    %c0_6 = arith.constant 0 : index
    %9 = vector.load %arg5[%c8, %c0_6] : memref<12x128xbf16, #tpu.memory_space<vmem>>, vector<4x15xbf16>
    tpu.vector_store %arg5[%c8, %c0_6], %8 {strides = array<i32>} : memref<12x128xbf16, #tpu.memory_space<vmem>>, vector<4x15xbf16>,
    %cst_7 = arith.constant 0.000000e+00 : bf16
    %10 = vector.broadcast %cst_7 : bf16 to vector<4x1xbf16>
    %c8_8 = arith.constant 8 : index
    %c15 = arith.constant 15 : index
    %11 = vector.load %arg5[%c8_8, %c15] : memref<12x128xbf16, #tpu.memory_space<vmem>>, vector<4x1xbf16>
    tpu.vector_store %arg5[%c8_8, %c15], %10 {strides = array<i32>} : memref<12x128xbf16, #tpu.memory_space<vmem>>, vector<4x1xbf16>,
    %c0_9 = arith.constant 0 : index
    %c0_10 = arith.constant 0 : index
    %12 = vector.load %arg2[%c0_9, %c0_10] : memref<16x12xbf16, #tpu.memory_space<vmem>>, vector<16x12xbf16>
    %c0_11 = arith.constant 0 : index
    %c0_12 = arith.constant 0 : index
    %13 = vector.load %arg5[%c0_11, %c0_12] : memref<12x128xbf16, #tpu.memory_space<vmem>>, vector<12x128xbf16>
    %cst_13 = arith.constant dense<0.000000e+00> : vector<16x128xf32>
    %14 = tpu.matmul %12, %13, %cst_13 {dimension_numbers = #tpu.dot_dimension_numbers<[1], [0], [0], [1], [0, 0, 1, 1], [], []>} : vector<16x12xbf16>, vector<12x128xbf16>, vector<16x128xf32> -> vector<16x128xf32>
    %c0_14 = arith.constant 0 : index
    %c0_15 = arith.constant 0 : index
    %15 = vector.load %arg3[%c0_14, %c0_15] : memref<16x1xf32, #tpu.memory_space<vmem>>, vector<16x1xf32>
    %16 = vector.extract_strided_slice %14 {offsets = [0, 0], sizes = [8, 16], strides = [1, 1]} : vector<16x128xf32> to vector<8x16xf32>
    %17 = vector.extract_strided_slice %15 {offsets = [0, 0], sizes = [8, 1], strides = [1, 1]} : vector<16x1xf32> to vector<8x1xf32>
    %18 = vector.broadcast %17 : vector<8x1xf32> to vector<8x16xf32>
    %19 = arith.addf %16, %18 : vector<8x16xf32>
    %20 = math.tanh %19 : vector<8x16xf32>
    %21 = vector.extract_strided_slice %14 {offsets = [8, 0], sizes = [8, 16], strides = [1, 1]} : vector<16x128xf32> to vector<8x16xf32>
    %22 = vector.extract_strided_slice %15 {offsets = [8, 0], sizes = [8, 1], strides = [1, 1]} : vector<16x1xf32> to vector<8x1xf32>
    %23 = vector.broadcast %22 : vector<8x1xf32> to vector<8x16xf32>
    %24 = arith.addf %21, %23 : vector<8x16xf32>
    %25 = arith.negf %24 : vector<8x16xf32>
    %26 = math.exp %25 : vector<8x16xf32>
    %cst_16 = arith.constant 1.000000e+00 : f32
    %27 = vector.broadcast %cst_16 : f32 to vector<8x16xf32>
    %28 = arith.addf %27, %26 : vector<8x16xf32>
    %29 = arith.divf %27, %28 : vector<8x16xf32>
    %30 = arith.mulf %20, %29 : vector<8x16xf32>
    %c0_17 = arith.constant 0 : index
    %c0_18 = arith.constant 0 : index
    %c0_19 = arith.constant 0 : index
    %31 = vector.load %arg4[%c0_17, %c0_18, %c0_19] : memref<1x8x16xf32, #tpu.memory_space<vmem>>, vector<1x8x16xf32>
    %32 = vector.shape_cast %31 : vector<1x8x16xf32> to vector<8x16xf32>
    %33 = vector.shape_cast %30 : vector<8x16xf32> to vector<1x8x16xf32>
    tpu.vector_store %arg4[%c0_17, %c0_18, %c0_19], %33 {strides = array<i32>} : memref<1x8x16xf32, #tpu.memory_space<vmem>>, vector<1x8x16xf32>,
    return
  }
  func.func @transform_0(%arg0: i32) -> (i32, i32, i32) {
    %c0_i32 = arith.constant 0 : i32
    %c0_i32_0 = arith.constant 0 : i32
    %c0_i32_1 = arith.constant 0 : i32
    return %arg0, %c0_i32, %c0_i32_0 : i32, i32, i32
  }
  func.func @transform_1(%arg0: i32) -> (i32, i32) {
    %c0_i32 = arith.constant 0 : i32
    %c0_i32_0 = arith.constant 0 : i32
    %c0_i32_1 = arith.constant 0 : i32
    return %c0_i32, %c0_i32_0 : i32, i32
  }
  func.func @transform_2(%arg0: i32) -> (i32, i32) {
    %c0_i32 = arith.constant 0 : i32
    %c0_i32_0 = arith.constant 0 : i32
    %c0_i32_1 = arith.constant 0 : i32
    return %c0_i32, %c0_i32_0 : i32, i32
  }
  func.func @transform_3(%arg0: i32) -> (i32, i32, i32) {
    %c0_i32 = arith.constant 0 : i32
    %c0_i32_0 = arith.constant 0 : i32
    %c0_i32_1 = arith.constant 0 : i32
    return %arg0, %c0_i32, %c0_i32_0 : i32, i32, i32
  }
}

</mosaic_0001>

<bundles_post_ra>
// kernel: tpu_custom_call.1
= control target key start
LH: loop header
LB: loop body
LE: loop exit
PB: predicated region body
PF: predicated region fallthrough
CT: control target
= control target key end

     0   :  { %8 = vsyncpa [#allocation4], 0  ;;  %s612_s0 = inlined_call_operand.vmem [shape: f32[2,4,16], index: 0, kind: input, shape index: {}]   ;;  %s613_s1 = inlined_call_operand.vmem [shape: bf16[16,12], index: 1, kind: input, shape index: {}]   ;;  %s614_s2 = inlined_call_operand.vmem [shape: f32[16,1], index: 2, kind: input, shape index: {}]   ;;  %s615_s3 = inlined_call_operand.hbm [shape: f32[2,8,16], index: 3, kind: output, shape index: {}]  }
   0x1   :  { %10 = vsyncpa [#allocation4 + $0x1], 0  ;;  %s516_s12 = smov 0   ;;  %s518_s13 = smov 0  }
   0x2   :  { %s520_s14 = smov 0   ;;  %s522_s15 = smov 0  }
   0x3 LB: > { %s537_s16 = sadd.s32 4294967295, %s488_s15   ;;  %s350_s17 = sadd.s32 4294967294, %s488_s15   ;;  %s488_s15 = sphi %s522_s15, %s621_s15   ;;  %s484_s14 = sphi %s520_s14, %s620_s14   ;;  %s480_s13 = sphi %s518_s13, %s619_s13   ;;  %s476_s12 = sphi %s516_s12, %s618_s12  }
   0x4   : > { %s541_s18 = sadd.s32 1, %s488_s15   ;;  %s91_s19 = sadd.s32 1, %s484_s14 }
   0x5   : > { %s88_s20 = ssub.s32 %s488_s15, %s541_s18  ;;  %p101_p0 = scmp.ne.s32.totalorder %s484_s14, %s480_s13 }
   0x6   : > { %p89_p1 = scmp.eq.s32.totalorder %s88_s20, 0  ;;  %p102_p2 = scmp.eq.s32.totalorder %s537_s16, 1 }
   0x7   : > { %p107_p3 = scmp.ne.s32.totalorder %s480_s13, %s476_s12  ;;  %p108_p4 = scmp.eq.s32.totalorder %s350_s17, 1 }
   0x8   : > { %s552_s21 = scalar_select %p89_p1, %s484_s14, %s91_s19  }
   0x9   : > { %p554_p5 = por %p102_p2, %p101_p0  ;;  %p558_p6 = por %p108_p4, %p107_p3 }
   0xa   : > { %p353_p7 = scmp.ge.s32.totalorder %s488_s15, 1  ;;  %p139_p8 = scmp.lt.s32.totalorder %s488_s15, 3 }
   0xc   : > { %p140_p9 = pnand %p353_p7, %p139_p8 }
   0xd   : > { %p162_p10 = scmp.lt.s32.totalorder (!%p140_p9), %s537_s16, 1  ;;  %s492_s29 = smov (!%p140_p9), 127  }
   0xe   : > { %143 = sbr.rel (%p140_p9) target bundleno = 403 (0x193), region = 32  ;;  %s494_s30 = smov (!%p140_p9), 1  }
   0xf   : > { %s159_s10 = sand.u32 (!%p140_p9), 1, %s480_s13   ;;  %s362_s17 = sshll.u32 (!%p140_p9), %s537_s16, 7 }
  0x10   : > { %s354_s11 = sshll.u32 (!%p140_p9), %s159_s10, 3  ;;  %s289_s26 = scalar_lea.hbm (!%p140_p9), %s615_s3, %s362_s17 }
  0x11   : > { %s161_s19 = scalar_lea.vmem (!%p140_p9), [#allocation3], %s354_s11  ;;  %s278_s27 = scalar_lea.sflag (!%p140_p9), [#allocation4], %s159_s10 }
  0x12   : > { %s291_s20 = sshll.u32 (!%p140_p9), %s161_s19, 4  ;;  %s292_s20 = int_to_ptr.vmem [resolvable:$true] %s291_s20 }
  0x13   : > { %vm169_vm0 = vcmask 1024   ;;  %v490_v0 = vmov 0   ;;  %s163_s24 = scalar_select %p162_p10, %s537_s16, 1  ;;  %v491_v1 = vmov 0.0   ;;  %vm181_vm1 = vcmask 125954   ;;  %v254_v5 = vld [vmem:[%s614_s2 + $0x8] sm:$0xff] }
  0x14   : > { %418 = vset.pattern.permute.xlu1 %v490_v0  ;;  %419 = vset.pattern.permute.xlu0 %v490_v0  ;;  %170 = vst.msk [vmem:[#allocation2] sm:$0x3] %vm169_vm0, %v490_v0  ;;  %vm493_vm2 = vmmov 0   ;;  %v253_v6 = vld [vmem:[%s614_s2] sm:$0xff]  ;;  %vm186_vm3 = vcmask 115712   ;;  %vm188_vm4 = vcmask 124024  }
  0x15   : > { %368 = vmatprep.subr.bf16.mxu0 %v491_v1  ;;  %s355_s25 = sshll.u32 %s163_s24, 2  ;;  %370 = vmatprep.mubr.msk.bf16.mxu0 %vm493_vm2, %v491_v1  ;;  %vm177_vm5 = vcmask 123912   ;;  %vm208_vm6 = vcmask 1045504   ;;  %v421_v11 = vld [vmem:[%s613_s1] sm:$0xff]   ;;  %vm204_vm7 = vcmask 97280   ;;  %vm275_vm8 = vcmask 130048  }
  0x16   : > { %s165_s28 = scalar_lea.vmem %s612_s0, %s355_s25  ;;  %264 = vperm.xlu1 %418, %v254_v5  }
  0x17   : > { %v167_v2 = vld [vmem:[%s165_s28] sm:$0xf]  ;;  %s428_s28 = scalar_lea.vmem %s292_s20, 128 }
  0x18   : > { %v365_v3 = vpack.c.bf16 %v167_v2, %v167_v2  ;;  %p429_p11 = scmp.ne.s32.totalorder %s292_s20, %s428_s28 }
  0x1a   : > { %183 = vrot.lane.b32.xlu0 %v365_v3, %s492_s29  ;;  %v179_v4 = vrot.slane %v365_v3, 6  ;;  %257 = vperm.xlu1 %418, %v253_v6   ;;  %p430_p12 = pnand %p429_p11, %p554_p5  ;;  %s495_s29 = smov [#allocation3]  }
  0x1b   : > { %s432_s16 = sshll.u32 %s495_s29, 4  ;;  %s433_s16 = int_to_ptr.vmem [resolvable:$false] %s432_s16 }
  0x1c   : > { %182 = vst.msk [vmem:[#allocation2] sm:$0xc] %vm181_vm1, %v179_v4  ;;  %p431_p13 = pneg %p430_p12  ;;  %p435_p0 = scmp.lt.s32.totalorder %s292_s20, %s433_s16 }
  0x1e   : > { %174 = vrot.lane.b32.xlu0 %v365_v3, %s494_s30  ;;  %s434_s30 = scalar_lea.vmem %s433_s16, 256 }
  0x1f   : > { %p436_p1 = scmp.lt.s32.totalorder %s434_s30, %s428_s28 }
  0x21   : > { %p437_p2 = por %p436_p1, %p435_p0 }
  0x23   : > { %p438_p3 = pnand %p437_p2, %p431_p13 }
  0x8c   : > { %v184_v7 = vpop.permute.xlu0 %183 }
  0x8d   : > { %187 = vst.msk [vmem:[#allocation2 + $0x4] sm:$0x3] %vm186_vm3, %v184_v7 }
  0x8e   : > { %189 = vst.msk [vmem:[#allocation2 + $0x4] sm:$0x3] %vm188_vm4, %v490_v0 }
  0x90   : > { %v175_v8 = vpop.permute.xlu0 %174 }
  0x91   : > { %178 = vst.msk [vmem:[#allocation2] sm:$0x3] %vm177_vm5, %v175_v8  ;;  %v265_v14 = vpop.permute.xlu1 %264 }
  0x95   : > { %v258_v19 = vpop.permute.xlu1 %257 }
  0x98   : > { %v420_v9 = vld [vmem:[#allocation2] sm:$0x3f]  }
  0x99   : > { %v210_v10 = vsel %vm208_vm6, %v420_v9, 0 }
  0x9a   : > { %369 = vmatpush3.bf16.msra.mxu0 %v210_v10 }
  0x9d   : > { %371 = vmatmul.mubr.msk.bf16.vlgmr.msra.gmra.mxu0 %vm204_vm7, %v421_v11 }
 0x15d   : > { %v246_v12 = vpop.f32.mrf.mxu0 }
 0x15e   : > { %v260_v20 = vadd.f32 %v258_v19, %v246_v12 }
 0x15f   : > { %v372_v13 = vpop.f32.mrf.mxu0 }
 0x161   : > { %v249_v15 = vpop.f32.mrf.mxu0 }
 0x162   : > { %v267_v16 = vadd.f32 %v265_v14, %v249_v15 }
 0x163   : > { %v373_v17 = vpop.f32.mrf.mxu0 }
 0x164   : > { %v360_v18 = vmul.f32 -1.442695, %v267_v16 }
 0x166   : > { %422 = vpow2.f32 %v360_v18 }
 0x167   : > { %424 = vtanh.f32 %v260_v20 }
 0x173   : > { %v423_v21 = vpop.eup %422 }
 0x174   : > { %v271_v22 = vadd.f32 1.0, %v423_v21  ;;  %v425_v23 = vpop.eup %424 }
 0x176   : > { %426 = vrcp.f32 %v271_v22 }
 0x183   : > { %v427_v24 = vpop.eup %426 }
 0x184   : > { %v274_v25 = vmul.f32 %v427_v24, %v425_v23 }
 0x186   : > { %276 = vst.msk [vmem:[%s161_s19] sm:$0xff] %vm275_vm8, %v274_v25 }
 0x187   : > { %441 = shalt.err (!%p438_p3)
}
 0x188   : > { %s442_s4 = scalar_lea.hbm %s289_s26, 128  ;;  %s446_s7 = scalar_lea.hbm %s615_s3, 256 }
 0x189   : > { %p443_p4 = scmp.ne.s32.totalorder %s289_s26, %s442_s4  ;;  %p447_p9 = scmp.lt.s32.totalorder %s289_s26, %s615_s3 }
 0x18a   : > { %p448_p10 = scmp.lt.s32.totalorder %s446_s7, %s442_s4 }
 0x18b   : > { %p444_p7 = pnand %p443_p4, %p554_p5 }
 0x18c   : > { %p449_p11 = por %p448_p10, %p447_p9 }
 0x18d   : > { %p445_p8 = pneg %p444_p7 }
 0x18f   : > { %p450_p12 = pnand %p449_p11, %p445_p8 }
 0x191   : > { %453 = shalt.err (!%p450_p12)
}
 0x192   : > { %374 = dma.vmem_to_hbm [thread:$0]  (%p554_p5), %s292_s20, 128, %s289_s26, %s278_s27  }
 0x193 PF: > { %p380_p13 = scmp.ge.s32.totalorder %s488_s15, 2  ;;  %s303_s10 = sand.u32 1, %s476_s12  }
 0x194   : > { %s304_s11 = scalar_lea.sflag [#allocation4], %s303_s10 }
 0x195   : > { %p377_p0 = pnand %p380_p13, %p558_p6 }
 0x197   : > { %p378_p1 = pneg %p377_p0 }
 0x199   : > { %471 = dma.done.wait (%p378_p1), %s304_s11, 128  }
 0x19a   : > { %473 = vsyncadd (%p378_p1), %s304_s11, 4294967168  ;;  %p13_p2 = scmp.ge.s32.totalorder %s541_s18, 4   ;;  %s618_s12 = smov %s480_s13 }
 0x19b   : > { %s619_s13 = smov %s484_s14  ;;  %s620_s14 = smov %s552_s21 }
 0x19c   : > { %s621_s15 = smov %s541_s18  ;;  %15 = sbr.rel (!%p13_p2) target bundleno = 3 (0x3), region = 67 }
 0x1a1   :  { %309 = vsyncpa [#allocation4], 1 }
 0x1a2   :  { %311 = vsyncpa [#allocation4 + $0x1], 1 }

</bundles_post_ra>
